<compile_context>
chip_gen: v5e
topology: v5e:2x2
jax: 0.10.0
libtpu: 0.0.40
codegen_flags: <defaults>
</compile_context>

<pallas_src>
import jax
import jax.numpy as jnp
import numpy as np
from jax.experimental import pallas as pl
from jax.experimental.pallas import tpu as pltpu

N_S = 33   # input state features
N_H = 36   # hidden width
N_A = 19   # actions (output)
EPS = 1e-5

# Row offsets inside the packed weight slab (8-aligned).
_OFF_CAT = 0           # fc1|fc_skip weights, rows 0..32, all 72 cols
_OFF_W2 = 40           # fc2 weight, rows 40..75, cols 0..35
_OFF_W3 = 80           # fc3 weight, rows 80..115, cols 0..35
_OFF_WFC = 120         # fc_out weight (padded to 36 cols), rows 120..155
_W_ROWS = 160          # total rows (padded to a multiple of 8)
_W_COLS = 2 * N_H      # 72 lanes


def dmlpq2_kernel(x_ref,      # [B, N_S]
                  w_ref,      # [_W_ROWS, _W_COLS]  packed weights
                  p_ref,      # [8, _W_COLS]        packed biases / BN affine
                  out_ref):   # [B, N_A]
    x = x_ref[...]
    p = p_ref[...]                               # one load, then vreg slices

    bcat = p[0:1, :]                             # fc1.b | fc_skip.b  [1, 72]
    b2   = p[1:2, :N_H]
    b3   = p[2:3, :N_H]
    g1   = p[3:4, :N_H]
    be1  = p[4:5, :N_H]
    g2   = p[5:6, :N_H]
    be2  = p[6:7, :N_H]
    bfc  = p[7:8, :N_H]

    # ---- fused fc1 | fc_skip : one MXU pass over x --------------------------
    wcat = w_ref[_OFF_CAT:_OFF_CAT + N_S, :]                     # [33, 72]
    y = jnp.dot(x, wcat, preferred_element_type=jnp.float32) + bcat
    y1 = y[:, :N_H]                                              # fc1(x)
    skip = y[:, N_H:]                                            # fc_skip(x)

    # ---- relu -> bn1 (train-mode batch stats; var = E[a^2] - E[a]^2) --------
    a1 = jnp.maximum(y1, 0.0)
    m1 = jnp.mean(a1, axis=0, keepdims=True)
    v1 = jnp.mean(a1 * a1, axis=0, keepdims=True) - m1 * m1
    s1 = g1 * jax.lax.rsqrt(v1 + EPS)
    x1 = a1 * s1 + (be1 - m1 * s1)

    # ---- fc2 -> relu -> bn2 --------------------------------------------------
    w2 = w_ref[_OFF_W2:_OFF_W2 + N_H, :N_H]
    a2 = jnp.maximum(
        jnp.dot(x1, w2, preferred_element_type=jnp.float32) + b2, 0.0)
    m2 = jnp.mean(a2, axis=0, keepdims=True)
    v2 = jnp.mean(a2 * a2, axis=0, keepdims=True) - m2 * m2
    s2 = g2 * jax.lax.rsqrt(v2 + EPS)
    x2 = a2 * s2 + (be2 - m2 * s2)

    # ---- fc3 -> relu, residual skip ------------------------------------------
    w3 = w_ref[_OFF_W3:_OFF_W3 + N_H, :N_H]
    a3 = jnp.maximum(
        jnp.dot(x2, w3, preferred_element_type=jnp.float32) + b3, 0.0)
    h = a3 + skip

    # ---- fc_out (weight zero-padded to 36 cols; only first 19 are real) -----
    wfc = w_ref[_OFF_WFC:_OFF_WFC + N_H, :N_H]
    o = jnp.dot(h, wfc, preferred_element_type=jnp.float32) + bfc
    out_ref[...] = o[:, :N_A]


def dmlpq2_forward(x, packed):
    """x: [B, N_S] float32 (same layout the PyTorch module receives)."""
    B = x.shape[0]
    vmem = pl.BlockSpec(memory_space=pltpu.MemorySpace.VMEM)
    return pl.pallas_call(
        dmlpq2_kernel,
        out_shape=jax.ShapeDtypeStruct((B, N_A), jnp.float32),
        in_specs=[vmem, vmem, vmem],
        out_specs=vmem,
    )(x, packed["wslab"], packed["pslab"])


def make_params(key):
    """Raw parameters in PyTorch layout (Linear weight = [out, in])."""
    ks = jax.random.split(key, 10)

    def rnd(k, shape, scale=0.1):
        return scale * jax.random.normal(k, shape, jnp.float32)

    return {
        "w1": rnd(ks[0], (N_H, N_S)),   "b1": rnd(ks[1], (N_H,)),
        "w2": rnd(ks[2], (N_H, N_H)),   "b2": rnd(ks[3], (N_H,)),
        "w3": rnd(ks[4], (N_H, N_H)),   "b3": rnd(ks[5], (N_H,)),
        "wsk": rnd(ks[6], (N_H, N_S)),  "bsk": rnd(ks[7], (N_H,)),
        "wfc": rnd(ks[8], (N_A, N_H)),  "bfc": rnd(ks[9], (N_A,)),
        "g1": jnp.ones((N_H,), jnp.float32), "be1": jnp.zeros((N_H,), jnp.float32),
        "g2": jnp.ones((N_H,), jnp.float32), "be2": jnp.zeros((N_H,), jnp.float32),
    }


def pack_params(p):
    """One-time packing into a single weight slab and a single vector slab."""
    wslab = jnp.zeros((_W_ROWS, _W_COLS), jnp.float32)
    wslab = wslab.at[_OFF_CAT:_OFF_CAT + N_S, :N_H].set(jnp.transpose(p["w1"]))
    wslab = wslab.at[_OFF_CAT:_OFF_CAT + N_S, N_H:].set(jnp.transpose(p["wsk"]))
    wslab = wslab.at[_OFF_W2:_OFF_W2 + N_H, :N_H].set(jnp.transpose(p["w2"]))
    wslab = wslab.at[_OFF_W3:_OFF_W3 + N_H, :N_H].set(jnp.transpose(p["w3"]))
    wslab = wslab.at[_OFF_WFC:_OFF_WFC + N_H, :N_A].set(jnp.transpose(p["wfc"]))

    pslab = jnp.zeros((8, _W_COLS), jnp.float32)
    pslab = pslab.at[0, :N_H].set(p["b1"])
    pslab = pslab.at[0, N_H:].set(p["bsk"])
    pslab = pslab.at[1, :N_H].set(p["b2"])
    pslab = pslab.at[2, :N_H].set(p["b3"])
    pslab = pslab.at[3, :N_H].set(p["g1"])
    pslab = pslab.at[4, :N_H].set(p["be1"])
    pslab = pslab.at[5, :N_H].set(p["g2"])
    pslab = pslab.at[6, :N_H].set(p["be2"])
    pslab = pslab.at[7, :N_A].set(p["bfc"])

    return {"wslab": wslab, "pslab": pslab}


def dmlpq2_reference(x, p):
    """Pure-JAX reference mirroring the PyTorch forward (train-mode BN)."""
    def lin(v, w, b):                      # PyTorch layout: w [out, in]
        return jnp.dot(v, jnp.transpose(w)) + b

    def bn(v, g, be):
        m = jnp.mean(v, axis=0, keepdims=True)
        var = jnp.mean((v - m) ** 2, axis=0, keepdims=True)
        return (v - m) * jax.lax.rsqrt(var + EPS) * g + be

    x_skip = lin(x, p["wsk"], p["bsk"])
    x1 = bn(jax.nn.relu(lin(x, p["w1"], p["b1"])), p["g1"], p["be1"])
    x2 = bn(jax.nn.relu(lin(x1, p["w2"], p["b2"])), p["g2"], p["be2"])
    x3 = x_skip + jax.nn.relu(lin(x2, p["w3"], p["b3"]))
    return lin(x3, p["wfc"], p["bfc"])


if __name__ == "__main__":
    key = jax.random.PRNGKey(0)
    k_x, k_p = jax.random.split(key)
    B = 2
    x = jax.random.normal(k_x, (B, N_S), jnp.float32)   # [n_batch, n_s]
    params = make_params(k_p)
    packed = pack_params(params)

    out = jax.block_until_ready(dmlpq2_forward(x, packed))
    assert out.shape == (B, N_A), out.shape

    ref = jax.block_until_ready(dmlpq2_reference(x, params))
    np.testing.assert_allclose(np.asarray(out), np.asarray(ref),
                               rtol=1e-4, atol=1e-4)
    print("KERNEL_OK")
</pallas_src>

<mosaic_0001>
module attributes {stable_mosaic.version = 11 : i64} {
  func.func @dmlpq2_kernel(%arg0: memref<2x33xf32, #tpu.memory_space<vmem>>, %arg1: memref<160x72xf32, #tpu.memory_space<vmem>>, %arg2: memref<8x72xf32, #tpu.memory_space<vmem>>, %arg3: memref<2x19xf32, #tpu.memory_space<vmem>>) attributes {dimension_semantics = [], scalar_prefetch = 0 : i64, scratch_operands = 0 : i64, tpu.core_type = #tpu.core_type<tc>} {
    %c0 = arith.constant 0 : index
    %c0_0 = arith.constant 0 : index
    %0 = vector.load %arg0[%c0, %c0_0] : memref<2x33xf32, #tpu.memory_space<vmem>>, vector<2x33xf32>
    %c0_1 = arith.constant 0 : index
    %c0_2 = arith.constant 0 : index
    %1 = vector.load %arg2[%c0_1, %c0_2] : memref<8x72xf32, #tpu.memory_space<vmem>>, vector<8x72xf32>
    %2 = vector.extract_strided_slice %1 {offsets = [0, 0], sizes = [1, 72], strides = [1, 1]} : vector<8x72xf32> to vector<1x72xf32>
    %3 = vector.extract_strided_slice %1 {offsets = [1, 0], sizes = [1, 36], strides = [1, 1]} : vector<8x72xf32> to vector<1x36xf32>
    %4 = vector.extract_strided_slice %1 {offsets = [2, 0], sizes = [1, 36], strides = [1, 1]} : vector<8x72xf32> to vector<1x36xf32>
    %5 = vector.extract_strided_slice %1 {offsets = [3, 0], sizes = [1, 36], strides = [1, 1]} : vector<8x72xf32> to vector<1x36xf32>
    %6 = vector.extract_strided_slice %1 {offsets = [4, 0], sizes = [1, 36], strides = [1, 1]} : vector<8x72xf32> to vector<1x36xf32>
    %7 = vector.extract_strided_slice %1 {offsets = [5, 0], sizes = [1, 36], strides = [1, 1]} : vector<8x72xf32> to vector<1x36xf32>
    %8 = vector.extract_strided_slice %1 {offsets = [6, 0], sizes = [1, 36], strides = [1, 1]} : vector<8x72xf32> to vector<1x36xf32>
    %9 = vector.extract_strided_slice %1 {offsets = [7, 0], sizes = [1, 36], strides = [1, 1]} : vector<8x72xf32> to vector<1x36xf32>
    %c0_3 = arith.constant 0 : index
    %c0_4 = arith.constant 0 : index
    %10 = vector.load %arg1[%c0_3, %c0_4] : memref<160x72xf32, #tpu.memory_space<vmem>>, vector<33x72xf32>
    %cst = arith.constant dense<0.000000e+00> : vector<2x72xf32>
    %11 = tpu.matmul %0, %10, %cst {dimension_numbers = #tpu.dot_dimension_numbers<[1], [0], [0], [1], [0, 0, 1, 1], [], []>} : vector<2x33xf32>, vector<33x72xf32>, vector<2x72xf32> -> vector<2x72xf32>
    %12 = vector.broadcast %2 : vector<1x72xf32> to vector<2x72xf32>
    %13 = arith.addf %11, %12 : vector<2x72xf32>
    %14 = vector.extract_strided_slice %13 {offsets = [0, 0], sizes = [2, 36], strides = [1, 1]} : vector<2x72xf32> to vector<2x36xf32>
    %15 = vector.extract_strided_slice %13 {offsets = [0, 36], sizes = [2, 36], strides = [1, 1]} : vector<2x72xf32> to vector<2x36xf32>
    %cst_5 = arith.constant 0.000000e+00 : f32
    %16 = vector.broadcast %cst_5 : f32 to vector<2x36xf32>
    %17 = arith.maximumf %14, %16 : vector<2x36xf32>
    %cst_6 = arith.constant dense<0.000000e+00> : vector<36xf32>
    %18 = vector.multi_reduction <add>, %17, %cst_6 [0] : vector<2x36xf32> to vector<36xf32>
    %19 = vector.shape_cast %18 : vector<36xf32> to vector<1x36xf32>
    %cst_7 = arith.constant 2.000000e+00 : f32
    %20 = vector.broadcast %cst_7 : f32 to vector<1x36xf32>
    %21 = arith.divf %19, %20 : vector<1x36xf32>
    %22 = arith.mulf %17, %17 : vector<2x36xf32>
    %cst_8 = arith.constant dense<0.000000e+00> : vector<36xf32>
    %23 = vector.multi_reduction <add>, %22, %cst_8 [0] : vector<2x36xf32> to vector<36xf32>
    %24 = vector.shape_cast %23 : vector<36xf32> to vector<1x36xf32>
    %cst_9 = arith.constant 2.000000e+00 : f32
    %25 = vector.broadcast %cst_9 : f32 to vector<1x36xf32>
    %26 = arith.divf %24, %25 : vector<1x36xf32>
    %27 = arith.mulf %21, %21 : vector<1x36xf32>
    %28 = arith.subf %26, %27 : vector<1x36xf32>
    %cst_10 = arith.constant 9.99999974E-6 : f32
    %29 = vector.broadcast %cst_10 : f32 to vector<1x36xf32>
    %30 = arith.addf %28, %29 : vector<1x36xf32>
    %31 = math.rsqrt %30 : vector<1x36xf32>
    %32 = arith.mulf %5, %31 : vector<1x36xf32>
    %33 = vector.broadcast %32 : vector<1x36xf32> to vector<2x36xf32>
    %34 = arith.mulf %17, %33 : vector<2x36xf32>
    %35 = arith.mulf %21, %32 : vector<1x36xf32>
    %36 = arith.subf %6, %35 : vector<1x36xf32>
    %37 = vector.broadcast %36 : vector<1x36xf32> to vector<2x36xf32>
    %38 = arith.addf %34, %37 : vector<2x36xf32>
    %c40 = arith.constant 40 : index
    %c0_11 = arith.constant 0 : index
    %39 = vector.load %arg1[%c40, %c0_11] : memref<160x72xf32, #tpu.memory_space<vmem>>, vector<36x36xf32>
    %cst_12 = arith.constant dense<0.000000e+00> : vector<2x36xf32>
    %40 = tpu.matmul %38, %39, %cst_12 {dimension_numbers = #tpu.dot_dimension_numbers<[1], [0], [0], [1], [0, 0, 1, 1], [], []>} : vector<2x36xf32>, vector<36x36xf32>, vector<2x36xf32> -> vector<2x36xf32>
    %41 = vector.broadcast %3 : vector<1x36xf32> to vector<2x36xf32>
    %42 = arith.addf %40, %41 : vector<2x36xf32>
    %cst_13 = arith.constant 0.000000e+00 : f32
    %43 = vector.broadcast %cst_13 : f32 to vector<2x36xf32>
    %44 = arith.maximumf %42, %43 : vector<2x36xf32>
    %cst_14 = arith.constant dense<0.000000e+00> : vector<36xf32>
    %45 = vector.multi_reduction <add>, %44, %cst_14 [0] : vector<2x36xf32> to vector<36xf32>
    %46 = vector.shape_cast %45 : vector<36xf32> to vector<1x36xf32>
    %cst_15 = arith.constant 2.000000e+00 : f32
    %47 = vector.broadcast %cst_15 : f32 to vector<1x36xf32>
    %48 = arith.divf %46, %47 : vector<1x36xf32>
    %49 = arith.mulf %44, %44 : vector<2x36xf32>
    %cst_16 = arith.constant dense<0.000000e+00> : vector<36xf32>
    %50 = vector.multi_reduction <add>, %49, %cst_16 [0] : vector<2x36xf32> to vector<36xf32>
    %51 = vector.shape_cast %50 : vector<36xf32> to vector<1x36xf32>
    %cst_17 = arith.constant 2.000000e+00 : f32
    %52 = vector.broadcast %cst_17 : f32 to vector<1x36xf32>
    %53 = arith.divf %51, %52 : vector<1x36xf32>
    %54 = arith.mulf %48, %48 : vector<1x36xf32>
    %55 = arith.subf %53, %54 : vector<1x36xf32>
    %cst_18 = arith.constant 9.99999974E-6 : f32
    %56 = vector.broadcast %cst_18 : f32 to vector<1x36xf32>
    %57 = arith.addf %55, %56 : vector<1x36xf32>
    %58 = math.rsqrt %57 : vector<1x36xf32>
    %59 = arith.mulf %7, %58 : vector<1x36xf32>
    %60 = vector.broadcast %59 : vector<1x36xf32> to vector<2x36xf32>
    %61 = arith.mulf %44, %60 : vector<2x36xf32>
    %62 = arith.mulf %48, %59 : vector<1x36xf32>
    %63 = arith.subf %8, %62 : vector<1x36xf32>
    %64 = vector.broadcast %63 : vector<1x36xf32> to vector<2x36xf32>
    %65 = arith.addf %61, %64 : vector<2x36xf32>
    %c80 = arith.constant 80 : index
    %c0_19 = arith.constant 0 : index
    %66 = vector.load %arg1[%c80, %c0_19] : memref<160x72xf32, #tpu.memory_space<vmem>>, vector<36x36xf32>
    %cst_20 = arith.constant dense<0.000000e+00> : vector<2x36xf32>
    %67 = tpu.matmul %65, %66, %cst_20 {dimension_numbers = #tpu.dot_dimension_numbers<[1], [0], [0], [1], [0, 0, 1, 1], [], []>} : vector<2x36xf32>, vector<36x36xf32>, vector<2x36xf32> -> vector<2x36xf32>
    %68 = vector.broadcast %4 : vector<1x36xf32> to vector<2x36xf32>
    %69 = arith.addf %67, %68 : vector<2x36xf32>
    %cst_21 = arith.constant 0.000000e+00 : f32
    %70 = vector.broadcast %cst_21 : f32 to vector<2x36xf32>
    %71 = arith.maximumf %69, %70 : vector<2x36xf32>
    %72 = arith.addf %71, %15 : vector<2x36xf32>
    %c120 = arith.constant 120 : index
    %c0_22 = arith.constant 0 : index
    %73 = vector.load %arg1[%c120, %c0_22] : memref<160x72xf32, #tpu.memory_space<vmem>>, vector<36x36xf32>
    %cst_23 = arith.constant dense<0.000000e+00> : vector<2x36xf32>
    %74 = tpu.matmul %72, %73, %cst_23 {dimension_numbers = #tpu.dot_dimension_numbers<[1], [0], [0], [1], [0, 0, 1, 1], [], []>} : vector<2x36xf32>, vector<36x36xf32>, vector<2x36xf32> -> vector<2x36xf32>
    %75 = vector.broadcast %9 : vector<1x36xf32> to vector<2x36xf32>
    %76 = arith.addf %74, %75 : vector<2x36xf32>
    %77 = vector.extract_strided_slice %76 {offsets = [0, 0], sizes = [2, 19], strides = [1, 1]} : vector<2x36xf32> to vector<2x19xf32>
    %c0_24 = arith.constant 0 : index
    %c0_25 = arith.constant 0 : index
    %78 = vector.load %arg3[%c0_24, %c0_25] : memref<2x19xf32, #tpu.memory_space<vmem>>, vector<2x19xf32>
    tpu.vector_store %arg3[%c0_24, %c0_25], %77 {strides = array<i32>} : memref<2x19xf32, #tpu.memory_space<vmem>>, vector<2x19xf32>,
    return
  }
}

</mosaic_0001>

<bundles_post_ra>
// kernel: tpu_custom_call.1
= control target key start
LH: loop header
LB: loop body
LE: loop exit
PB: predicated region body
PF: predicated region fallthrough
CT: control target
= control target key end

     0   :  { %vm27_vm0 = vcmask 1040384   ;;  %s418_s0 = inlined_call_operand.vmem [shape: f32[2,33], index: 0, kind: input, shape index: {}]   ;;  %s419_s1 = inlined_call_operand.vmem [shape: f32[160,72], index: 1, kind: input, shape index: {}]   ;;  %s420_s2 = inlined_call_operand.vmem [shape: f32[8,72], index: 2, kind: input, shape index: {}]   ;;  %s421_s3 = inlined_call_operand.hbm [shape: f32[2,19], index: 3, kind: output, shape index: {}]  }
   0x1   :  { %v21_v0 = vld [vmem:[%s419_s1 + $0x20] sm:$0x1]  ;;  %v20_v1 = vld [vmem:[%s419_s1 + $0x18] sm:$0xff]  ;;  %v19_v2 = vld [vmem:[%s419_s1 + $0x10] sm:$0xff] }
   0x2   :  { %263 = vmatpush.msk.msra.mxu0 %vm27_vm0, %v21_v0 }
   0x3   :  { %8 = vsyncpa [#allocation3], 0  ;;  %v18_v3 = vld [vmem:[%s419_s1 + $0x8] sm:$0xff]  ;;  %v17_v4 = vld [vmem:[%s419_s1] sm:$0xff]  ;;  %vm23_vm1 = vcmask 269312   ;;  %vm110_vm2 = vcmask 1043456  }
   0x4   :  { %43 = vmatpush.msra.mxu0 %v20_v1  ;;  %v15_v5 = vld [vmem:[%s418_s0] sm:$0x3]  ;;  %v104_v6 = vld [vmem:[%s419_s1 + $0x48] sm:$0xf]  ;;  %v102_v8 = vld [vmem:[%s419_s1 + $0x38] sm:$0xff]  ;;  %v306_v10 = vmov 2.0  }
   0x5   :  { %v103_v7 = vld [vmem:[%s419_s1 + $0x40] sm:$0xff]  ;;  %265 = vmatpush.msk.msra.mxu1 %vm110_vm2, %v104_v6  ;;  %v101_v9 = vld [vmem:[%s419_s1 + $0x30] sm:$0xff]  ;;  %274 = vrcp.f32 %v306_v10  ;;  %v100_v11 = vld [vmem:[%s419_s1 + $0x28] sm:$0xff]  ;;  %vm52_vm3 = vcmask 287744   ;;  %s307_s8 = smov 92   ;;  %vm106_vm8 = vcmask 293888  }
   0x6   :  { %44 = vmatpush.msra.mxu0 %v19_v2  ;;  %v366_v12 = vld [vmem:[%s420_s2] sm:$0xff]  ;;  %v179_v10 = vld [vmem:[%s419_s1 + $0x70] sm:$0xf]  ;;  %s308_s28 = smov [#allocation2]   ;;  %s254_s4 = sshll.u32 %s421_s3, 4  ;;  %vm245_vm12 = vcmask 148480   ;;  %s255_s4 = int_to_ptr.hbm [resolvable:$true] %s254_s4 }
   0x7   :  { %126 = vmatpush.msra.mxu1 %v103_v7  ;;  %v22_v14 = vperm.slane %v366_v12, 0  ;;  %v105_v58 = vperm.slane %v366_v12, 1  ;;  %267 = vmatpush.msk.msra.mxu2 %vm110_vm2, %v179_v10  ;;  %s252_s29 = sshll.u32 %s308_s28, 4  ;;  %s253_s29 = int_to_ptr.vmem [resolvable:$true] %s252_s29 }
   0x8   :  { %45 = vmatpush.msra.mxu0 %v18_v3 }
   0x9   :  { %127 = vmatpush.msra.mxu1 %v102_v8 }
   0xa   :  { %46 = vmatpush.msra.mxu0 %v17_v4 }
   0xb   :  { %264 = vmatmul.msk.f32.vlgmr.msra.gmra.mxu0 %vm23_vm1, %v15_v5  ;;  %128 = vmatpush.msra.mxu1 %v101_v9  ;;  %v275_v13 = vpop.eup %274 }
   0xc   :  { %v61_v15 = vmul.f32 2.0, %v275_v13  ;;  %vm65_vm4 = vweird.f32 %v275_v13 }
   0xd   :  { %129 = vmatpush.msra.mxu1 %v100_v11 }
   0xe   :  { %v62_v19 = vsub.f32 1.0, %v61_v15  ;;  %v177_v15 = vld [vmem:[%s419_s1 + $0x60] sm:$0xff] }
  0x10   :  { %v63_v24 = vmul.f32 %v275_v13, %v62_v19 }
  0x12   :  { %v64_v29 = vadd.f32 %v275_v13, %v63_v24  ;;  %v217_v24 = vld [vmem:[%s419_s1 + $0x98] sm:$0xf] }
  0x13   :  { %269 = vmatpush.msk.msra.mxu3 %vm110_vm2, %v217_v24 }
  0x14   :  { %v66_v34 = vsel %vm65_vm4, %v275_v13, %v64_v29 }
  0x88   :  { %v48_v16 = vpop.f32.mrf.mxu0 }
  0x89   :  { %v49_v17 = vadd.f32 %v48_v16, %v22_v14  ;;  %v178_v14 = vld [vmem:[%s419_s1 + $0x68] sm:$0xff] }
  0x8a   :  { %199 = vmatpush.msra.mxu2 %v178_v14 }
  0x8b   :  { %v51_v18 = vmax.f32 %v49_v17, 0.0  ;;  %209 = vrot.lane.b32.xlu0 %v49_v17, %s307_s8 }
  0x8c   :  { %200 = vmatpush.msra.mxu2 %v177_v15 }
  0x8d   :  { %v53_v20 = vsel %vm52_vm3, %v51_v18, 0.0  ;;  %v68_v21 = vmul.f32 %v51_v18, %v51_v18 }
  0x8e   :  { %v54_v22 = vrot.slane %v53_v20, 4 }
  0x8f   :  { %v69_v23 = vsel %vm52_vm3, %v68_v21, 0.0  ;;  %v175_v21 = vld [vmem:[%s419_s1 + $0x50] sm:$0xff] }
  0x90   :  { %v55_v25 = vadd.f32 %v54_v22, %v53_v20  ;;  %v70_v26 = vrot.slane %v69_v23, 4 }
  0x92   :  { %v56_v27 = vrot.slane %v55_v25, 2  ;;  %v71_v28 = vadd.f32 %v70_v26, %v69_v23 }
  0x94   :  { %v57_v30 = vadd.f32 %v56_v27, %v55_v25  ;;  %v72_v31 = vrot.slane %v71_v28, 2 }
  0x96   :  { %v58_v32 = vrot.slane %v57_v30, 1  ;;  %v73_v33 = vadd.f32 %v72_v31, %v71_v28 }
  0x98   :  { %v59_v35 = vadd.f32 %v58_v32, %v57_v30  ;;  %v74_v36 = vrot.slane %v73_v33, 1 }
  0x9a   :  { %v75_v37 = vadd.f32 %v74_v36, %v73_v33  ;;  %v67_v38 = vmul.f32 %v66_v34, %v59_v35 }
  0x9c   :  { %v76_v39 = vmul.f32 %v75_v37, %v66_v34  ;;  %v77_v40 = vmul.f32 %v67_v38, %v67_v38 }
  0x9e   :  { %v78_v41 = vsub.f32 %v76_v39, %v77_v40  ;;  %v216_v40 = vld [vmem:[%s419_s1 + $0x90] sm:$0xff] }
  0x9f   :  { %237 = vmatpush.msra.mxu3 %v216_v40 }
  0xa0   :  { %v79_v42 = vadd.f32 1e-05, %v78_v41  ;;  %v215_v41 = vld [vmem:[%s419_s1 + $0x88] sm:$0xff] }
  0xa1   :  { %238 = vmatpush.msra.mxu3 %v215_v41 }
  0xa2   :  { %276 = vrsqrt.f32 %v79_v42  ;;  %vm86_vm6 = vweird.f32 %v79_v42 }
  0xa8   :  { %v277_v43 = vpop.eup %276 }
  0xa9   :  { %v81_v44 = vmul.f32 %v277_v43, %v79_v42  ;;  %vm87_vm5 = vweird.f32 %v277_v43  ;;  %v214_v42 = vld [vmem:[%s419_s1 + $0x80] sm:$0xff] }
  0xaa   :  { %vm88_vm7 = vmor %vm86_vm6, %vm87_vm5  ;;  %239 = vmatpush.msra.mxu3 %v214_v42 }
  0xab   :  { %v82_v45 = vmul.f32 %v277_v43, %v81_v44  ;;  %v180_v44 = vperm.slane %v366_v12, 2 }
  0xad   :  { %v83_v46 = vmul.f32 0.5, %v82_v45 }
  0xaf   :  { %v84_v47 = vsub.f32 1.5, %v83_v46 }
  0xb1   :  { %v85_v48 = vmul.f32 %v277_v43, %v84_v47 }
  0xb3   :  { %v89_v49 = vsel %vm88_vm7, %v277_v43, %v85_v48  ;;  %v213_v43 = vld [vmem:[%s419_s1 + $0x78] sm:$0xff] }
  0xb4   :  { %v90_v50 = vmul.f32 %v89_v49, %v366_v12  ;;  %240 = vmatpush.msra.mxu3 %v213_v43 }
  0xb6   :  { %v93_v51 = vmul.f32 %v90_v50, %v67_v38  ;;  %v91_v52 = vperm.slane %v90_v50, 3  ;;  %v218_v50 = vperm.slane %v366_v12, 7 }
  0xb8   :  { %v95_v53 = vrot.slane %v93_v51, 7  ;;  %v92_v55 = vmul.f32 %v91_v52, %v51_v18  ;;  %v176_v18 = vld [vmem:[%s419_s1 + $0x58] sm:$0xff] }
  0xb9   :  { %201 = vmatpush.msra.mxu2 %v176_v18 }
  0xba   :  { %v97_v54 = vsub.f32 %v366_v12, %v95_v53 }
  0xbb   :  { %202 = vmatpush.msra.mxu2 %v175_v21 }
  0xbc   :  { %v98_v56 = vperm.slane %v97_v54, 4 }
  0xbe   :  { %v99_v57 = vadd.f32 %v98_v56, %v92_v55 }
  0xc0   :  { %266 = vmatmul.msk.f32.vlgmr.msra.gmra.mxu1 %vm106_vm8, %v99_v57 }
  0xfd   :  { %v210_v48 = vpop.permute.xlu0 %209 }
 0x13d   :  { %v131_v59 = vpop.f32.mrf.mxu1 }
 0x13e   :  { %v132_v60 = vadd.f32 %v131_v59, %v105_v58 }
 0x140   :  { %v134_v61 = vmax.f32 %v132_v60, 0.0 }
 0x142   :  { %v135_v62 = vsel %vm52_vm3, %v134_v61, 0.0  ;;  %v143_v63 = vmul.f32 %v134_v61, %v134_v61 }
 0x143   :  { %v136_v0 = vrot.slane %v135_v62, 4 }
 0x144   :  { %v144_v1 = vsel %vm52_vm3, %v143_v63, 0.0 }
 0x145   :  { %v137_v2 = vadd.f32 %v136_v0, %v135_v62  ;;  %v145_v3 = vrot.slane %v144_v1, 4 }
 0x147   :  { %v138_v4 = vrot.slane %v137_v2, 2  ;;  %v146_v5 = vadd.f32 %v145_v3, %v144_v1 }
 0x149   :  { %v139_v6 = vadd.f32 %v138_v4, %v137_v2  ;;  %v147_v7 = vrot.slane %v146_v5, 2 }
 0x14b   :  { %v140_v8 = vrot.slane %v139_v6, 1  ;;  %v148_v9 = vadd.f32 %v147_v7, %v146_v5 }
 0x14d   :  { %v141_v11 = vadd.f32 %v140_v8, %v139_v6  ;;  %v149_v13 = vrot.slane %v148_v9, 1 }
 0x14f   :  { %v142_v16 = vmul.f32 %v141_v11, %v66_v34  ;;  %v150_v17 = vadd.f32 %v149_v13, %v148_v9 }
 0x151   :  { %v151_v19 = vmul.f32 %v150_v17, %v66_v34  ;;  %v152_v20 = vmul.f32 %v142_v16, %v142_v16 }
 0x153   :  { %v153_v22 = vsub.f32 %v151_v19, %v152_v20 }
 0x155   :  { %v154_v23 = vadd.f32 1e-05, %v153_v22 }
 0x157   :  { %278 = vrsqrt.f32 %v154_v23  ;;  %vm161_vm10 = vweird.f32 %v154_v23 }
 0x15d   :  { %v279_v25 = vpop.eup %278 }
 0x15e   :  { %v156_v26 = vmul.f32 %v279_v25, %v154_v23  ;;  %vm162_vm9 = vweird.f32 %v279_v25 }
 0x15f   :  { %vm163_vm11 = vmor %vm161_vm10, %vm162_vm9 }
 0x160   :  { %v157_v27 = vmul.f32 %v279_v25, %v156_v26 }
 0x162   :  { %v158_v28 = vmul.f32 0.5, %v157_v27 }
 0x164   :  { %v159_v29 = vsub.f32 1.5, %v158_v28 }
 0x166   :  { %v160_v30 = vmul.f32 %v279_v25, %v159_v29 }
 0x168   :  { %v164_v31 = vsel %vm163_vm11, %v279_v25, %v160_v30 }
 0x169   :  { %v165_v32 = vmul.f32 %v164_v31, %v366_v12 }
 0x16b   :  { %v168_v33 = vmul.f32 %v165_v32, %v142_v16  ;;  %v166_v34 = vperm.slane %v165_v32, 5 }
 0x16d   :  { %v170_v35 = vrot.slane %v168_v33, 7  ;;  %v167_v37 = vmul.f32 %v166_v34, %v134_v61 }
 0x16f   :  { %v172_v36 = vsub.f32 %v366_v12, %v170_v35 }
 0x171   :  { %v173_v38 = vperm.slane %v172_v36, 6 }
 0x173   :  { %v174_v39 = vadd.f32 %v173_v38, %v167_v37 }
 0x175   :  { %268 = vmatmul.msk.f32.vlgmr.msra.gmra.mxu2 %vm106_vm8, %v174_v39 }
 0x1f8   :  { %v204_v45 = vpop.f32.mrf.mxu2 }
 0x1f9   :  { %v205_v46 = vadd.f32 %v204_v45, %v180_v44 }
 0x1fb   :  { %v207_v47 = vmax.f32 %v205_v46, 0.0 }
 0x1fd   :  { %v212_v49 = vadd.f32 %v210_v48, %v207_v47 }
 0x1ff   :  { %270 = vmatmul.msk.f32.vlgmr.msra.gmra.mxu3 %vm106_vm8, %v212_v49 }
 0x282   :  { %v242_v51 = vpop.f32.mrf.mxu3 }
 0x283   :  { %v243_v52 = vadd.f32 %v242_v51, %v218_v50 }
 0x285   :  { %246 = vst.msk [vmem:[#allocation2] sm:$0x3] %vm245_vm12, %v243_v52 }
 0x286   :  { %257 = dma.vmem_to_hbm [thread:$0]  %s253_s29, 32, %s255_s4, [#allocation3]  }
 0x287   :  { %304 = dma.done.wait [#allocation3], 32  }
 0x288   :  { %305 = vsyncadd [#allocation3], 4294967264 }
 0x289   :  { %262 = vsyncpa [#allocation3], 1 }

</bundles_post_ra>
